<compile_context>
chip_gen: v7x
topology: tpu7x:2x2x1
jax: 0.10.0
libtpu: 0.0.40
codegen_flags: <defaults>
</compile_context>

<pallas_src>
import functools

import jax
import jax.numpy as jnp
from jax.experimental import pallas as pl
from jax.experimental.pallas import tpu as pltpu


def ncf_fused_gather_kernel(uidx_ref, iidx_ref, at_ref, bt_ref, w2_ref, out_ref):
    """Fused gather + MLP (hot path).

    uidx_ref, iidx_ref : (1, TB) int32  batch indices, batch along lanes
    at_ref             : (K, NU) f32    w1[:, :K] @ W.T + b1  (VMEM resident)
    bt_ref             : (K, NI) f32    w1[:, K:] @ H.T       (VMEM resident)
    w2_ref             : (K, 1)  f32    linear_2.weight (column, no bias)
    out_ref            : (1, TB) f32    lane-dense output slab
    """
    tb = uidx_ref.shape[1]
    nu = at_ref.shape[1]
    ni = bt_ref.shape[1]

    # One-hot gather on the MXU: each column selects one table row (exact,
    # since entries are exactly 0.0 / 1.0 and exactly one 1 per column).
    onehot_u = (jax.lax.broadcasted_iota(jnp.int32, (nu, tb), 0)
                == uidx_ref[...]).astype(jnp.float32)
    onehot_v = (jax.lax.broadcasted_iota(jnp.int32, (ni, tb), 0)
                == iidx_ref[...]).astype(jnp.float32)

    # h1.T = (w1a @ W.T + b1)[:, u] + (w1b @ H.T)[:, v]   -- no concat needed.
    h1 = (jnp.dot(at_ref[...], onehot_u, preferred_element_type=jnp.float32)
          + jnp.dot(bt_ref[...], onehot_v, preferred_element_type=jnp.float32))
    h1 = jnp.maximum(h1, 0.0)

    # linear_2 (output width 1): VPU multiply + sublane reduce -> result on lanes.
    out_ref[...] = jnp.sum(w2_ref[...] * h1, axis=0, keepdims=True).astype(out_ref.dtype)


def ncf_pregathered_kernel(ua_ref, vb_ref, w2_ref, out_ref):
    """Fallback path: linear_1 is pre-folded into the gathered streams.

    ua_ref : (K, TB)  (w1[:, :K] @ W.T + b1) gathered at user idx, transposed
    vb_ref : (K, TB)  (w1[:, K:] @ H.T)      gathered at item idx, transposed
    w2_ref : (K, 1)
    out_ref: (1, TB)
    """
    h1 = jnp.maximum(ua_ref[...] + vb_ref[...], 0.0)
    out_ref[...] = jnp.sum(w2_ref[...] * h1, axis=0, keepdims=True).astype(out_ref.dtype)


def _round_up(n, m):
    return ((n + m - 1) // m) * m


def _round_down_128(n):
    return max(128, (n // 128) * 128)


@functools.partial(jax.jit, static_argnames=("tb", "fuse_gather"))
def ncf_cvib_forward(x, W, H, w1, b1, w2, *, tb=4096, fuse_gather=None):
    """NCF_CVIB.forward(x, is_training=False) -> out of shape (B, 1)."""
    B = x.shape[0]
    NU, K = W.shape
    NI = H.shape[0]

    user_idx = x[:, 0].astype(jnp.int32)
    item_idx = x[:, 1].astype(jnp.int32)

    # Fold linear_1 (and its bias) into the embedding tables at trace time:
    #   h1.T = (w1[:, :K] @ W.T + b1)[:, u] + (w1[:, K:] @ H.T)[:, v]
    At = jnp.dot(w1[:, :K], W.T, preferred_element_type=jnp.float32) + b1.reshape(K, 1)  # (K, NU)
    Bt = jnp.dot(w1[:, K:], H.T, preferred_element_type=jnp.float32)                     # (K, NI)
    w2c = w2.reshape(K, 1)                                                               # (K, 1)

    if fuse_gather is None:
        # In-kernel one-hot gather is the win while tables comfortably fit VMEM
        # (v7x has only 64 MiB physical) and the one-hot intermediate stays small.
        fuse_gather = (NU + NI) <= 2048

    # Lane-dense batch tile: multiple of 128, big enough to amortize the
    # ~0.35us fixed per-grid-step overhead, but keep >= 2 "parallel" steps so
    # both v7x TensorCores get work.
    B128 = _round_up(B, 128)
    tb_eff = min(_round_down_128(tb), B128)
    if B128 >= 256:
        tb_eff = min(tb_eff, _round_down_128(B128 // 2))
    if fuse_gather:
        # Keep the per-step one-hot intermediates (NU+NI, tb) f32 under ~8 MiB.
        tb_eff = min(tb_eff, _round_down_128((8 << 20) // (4 * (NU + NI))))

    B_pad = _round_up(B, tb_eff)
    pad = B_pad - B
    u_p = jnp.pad(user_idx, (0, pad)).reshape(1, B_pad)   # padded lanes use idx 0
    v_p = jnp.pad(item_idx, (0, pad)).reshape(1, B_pad)   # (their outputs are discarded)
    grid = (B_pad // tb_eff,)

    compiler_params = pltpu.CompilerParams(
        dimension_semantics=("parallel",),
        # Raise the scoped VMEM limit (v5e default is only 16 MiB) while staying
        # well under v7x's 64 MiB physical VMEM.
        vmem_limit_bytes=48 * 1024 * 1024,
    )

    if fuse_gather:
        out_t = pl.pallas_call(
            ncf_fused_gather_kernel,
            out_shape=jax.ShapeDtypeStruct((1, B_pad), jnp.float32),
            grid_spec=pltpu.PrefetchScalarGridSpec(
                num_scalar_prefetch=0,
                grid=grid,
                in_specs=[
                    pl.BlockSpec((1, tb_eff), lambda i: (0, i)),   # user indices tile
                    pl.BlockSpec((1, tb_eff), lambda i: (0, i)),   # item indices tile
                    pl.BlockSpec((K, NU), lambda i: (0, 0)),       # folded user table (resident)
                    pl.BlockSpec((K, NI), lambda i: (0, 0)),       # folded item table (resident)
                    pl.BlockSpec((K, 1), lambda i: (0, 0)),        # linear_2.weight
                ],
                out_specs=pl.BlockSpec((1, tb_eff), lambda i: (0, i)),
            ),
            compiler_params=compiler_params,
        )(u_p, v_p, At, Bt, w2c)
    else:
        # Large-table fallback: gather the *folded* tables outside the kernel,
        # already transposed so batch lies on lanes; the kernel is pure VPU.
        # TODO(synk): fuse this path too via scalar-prefetched DMA gather
        # (memory_space=pl.ANY) to avoid the gathered stream's HBM round-trip.
        Ua = jnp.take(At, u_p[0], axis=1)   # (K, B_pad)
        Vb = jnp.take(Bt, v_p[0], axis=1)   # (K, B_pad)
        out_t = pl.pallas_call(
            ncf_pregathered_kernel,
            out_shape=jax.ShapeDtypeStruct((1, B_pad), jnp.float32),
            grid_spec=pltpu.PrefetchScalarGridSpec(
                num_scalar_prefetch=0,
                grid=grid,
                in_specs=[
                    pl.BlockSpec((K, tb_eff), lambda i: (0, i)),
                    pl.BlockSpec((K, tb_eff), lambda i: (0, i)),
                    pl.BlockSpec((K, 1), lambda i: (0, 0)),
                ],
                out_specs=pl.BlockSpec((1, tb_eff), lambda i: (0, i)),
            ),
            compiler_params=compiler_params,
        )(Ua, Vb, w2c)

    # Drop padding, restore the (B, 1) layout expected by the module.
    return out_t[0, :B].reshape(B, 1)


def reference_forward(x, W, H, w1, b1, w2):
    """Pure-JAX reference mirroring the PyTorch module exactly."""
    U = jnp.take(W, x[:, 0], axis=0)
    V = jnp.take(H, x[:, 1], axis=0)
    z = jnp.concatenate([U, V], axis=1)
    h1 = jax.nn.relu(z @ w1.T + b1)
    return h1 @ w2.T


if __name__ == "__main__":
    num_users, num_items, embedding_k = 10, 12, 4

    key = jax.random.PRNGKey(0)
    k_w, k_h, k_w1, k_b1, k_w2, k_u, k_i, k_u2, k_i2 = jax.random.split(key, 9)

    # Deterministic synthetic parameters (shapes follow the module __init__).
    W = jax.random.normal(k_w, (num_users, embedding_k), dtype=jnp.float32)     # nn.Embedding
    H = jax.random.normal(k_h, (num_items, embedding_k), dtype=jnp.float32)     # nn.Embedding
    lim1 = 1.0 / jnp.sqrt(2.0 * embedding_k)
    w1 = jax.random.uniform(k_w1, (embedding_k, 2 * embedding_k),
                            minval=-lim1, maxval=lim1, dtype=jnp.float32)        # linear_1.weight
    b1 = jax.random.uniform(k_b1, (embedding_k,),
                            minval=-lim1, maxval=lim1, dtype=jnp.float32)        # linear_1.bias
    lim2 = 1.0 / jnp.sqrt(float(embedding_k))
    w2 = jax.random.uniform(k_w2, (1, embedding_k),
                            minval=-lim2, maxval=lim2, dtype=jnp.float32)        # linear_2.weight

    # Small case (module defaults / tiny batch) -> fused-gather path, 1 step.
    B = 8
    user_idx = jax.random.randint(k_u, (B,), 0, num_users, dtype=jnp.int32)
    item_idx = jax.random.randint(k_i, (B,), 0, num_items, dtype=jnp.int32)
    x = jnp.stack([user_idx, item_idx], axis=1)

    out = jax.block_until_ready(ncf_cvib_forward(x, W, H, w1, b1, w2))
    ref = reference_forward(x, W, H, w1, b1, w2)
    assert out.shape == (B, 1), out.shape
    assert jnp.allclose(out, ref, atol=1e-5, rtol=1e-5), (out, ref)

    # Larger, non-multiple-of-tile batch: padding + multi-step "parallel" grid.
    B2 = 1000
    user_idx2 = jax.random.randint(k_u2, (B2,), 0, num_users, dtype=jnp.int32)
    item_idx2 = jax.random.randint(k_i2, (B2,), 0, num_items, dtype=jnp.int32)
    x2 = jnp.stack([user_idx2, item_idx2], axis=1)

    out2 = jax.block_until_ready(ncf_cvib_forward(x2, W, H, w1, b1, w2, tb=4096))
    ref2 = reference_forward(x2, W, H, w1, b1, w2)
    assert out2.shape == (B2, 1), out2.shape
    assert jnp.allclose(out2, ref2, atol=1e-5, rtol=1e-5)

    # Exercise the large-table fallback (pre-gathered, pure-VPU) path as well.
    out3 = jax.block_until_ready(
        ncf_cvib_forward(x2, W, H, w1, b1, w2, tb=4096, fuse_gather=False))
    assert jnp.allclose(out3, ref2, atol=1e-5, rtol=1e-5)

    print("KERNEL_OK")
</pallas_src>

<mosaic_0001>
module attributes {stable_mosaic.version = 11 : i64} {
  func.func @ncf_fused_gather_kernel(%arg0: i32, %arg1: memref<1x128xi32, #tpu.memory_space<vmem>>, %arg2: memref<1x128xi32, #tpu.memory_space<vmem>>, %arg3: memref<4x10xf32, #tpu.memory_space<vmem>>, %arg4: memref<4x12xf32, #tpu.memory_space<vmem>>, %arg5: memref<4x1xf32, #tpu.memory_space<vmem>>, %arg6: memref<1x128xf32, #tpu.memory_space<vmem>>) attributes {dimension_semantics = [#tpu.dimension_semantics<parallel>], iteration_bounds = array<i64: 1>, scalar_prefetch = 0 : i64, scratch_operands = 0 : i64, tpu.core_type = #tpu.core_type<tc>, window_params = [{transform_indices = @transform_0, window_bounds = array<i64: 1, 128>}, {transform_indices = @transform_1, window_bounds = array<i64: 1, 128>}, {pipeline_mode = #tpu.pipeline_mode<synchronous>, transform_indices = @transform_2, window_bounds = array<i64: 4, 10>}, {pipeline_mode = #tpu.pipeline_mode<synchronous>, transform_indices = @transform_3, window_bounds = array<i64: 4, 12>}, {pipeline_mode = #tpu.pipeline_mode<synchronous>, transform_indices = @transform_4, window_bounds = array<i64: 4, 1>}, {transform_indices = @transform_5, window_bounds = array<i64: 1, 128>}]} {
    %0 = tpu.iota {dimensions = array<i32: 0>} : vector<10x128xi32>
    %c0 = arith.constant 0 : index
    %c0_0 = arith.constant 0 : index
    %1 = vector.load %arg1[%c0, %c0_0] : memref<1x128xi32, #tpu.memory_space<vmem>>, vector<1x128xi32>
    %2 = vector.broadcast %1 : vector<1x128xi32> to vector<10x128xi32>
    %3 = arith.cmpi eq, %0, %2 : vector<10x128xi32>
    %4 = arith.extui %3 : vector<10x128xi1> to vector<10x128xi32>
    %5 = arith.sitofp %4 : vector<10x128xi32> to vector<10x128xf32>
    %6 = tpu.iota {dimensions = array<i32: 0>} : vector<12x128xi32>
    %c0_1 = arith.constant 0 : index
    %c0_2 = arith.constant 0 : index
    %7 = vector.load %arg2[%c0_1, %c0_2] : memref<1x128xi32, #tpu.memory_space<vmem>>, vector<1x128xi32>
    %8 = vector.broadcast %7 : vector<1x128xi32> to vector<12x128xi32>
    %9 = arith.cmpi eq, %6, %8 : vector<12x128xi32>
    %10 = arith.extui %9 : vector<12x128xi1> to vector<12x128xi32>
    %11 = arith.sitofp %10 : vector<12x128xi32> to vector<12x128xf32>
    %c0_3 = arith.constant 0 : index
    %c0_4 = arith.constant 0 : index
    %12 = vector.load %arg3[%c0_3, %c0_4] : memref<4x10xf32, #tpu.memory_space<vmem>>, vector<4x10xf32>
    %cst = arith.constant dense<0.000000e+00> : vector<4x128xf32>
    %13 = tpu.matmul %12, %5, %cst {dimension_numbers = #tpu.dot_dimension_numbers<[1], [0], [0], [1], [0, 0, 1, 1], [], []>} : vector<4x10xf32>, vector<10x128xf32>, vector<4x128xf32> -> vector<4x128xf32>
    %c0_5 = arith.constant 0 : index
    %c0_6 = arith.constant 0 : index
    %14 = vector.load %arg4[%c0_5, %c0_6] : memref<4x12xf32, #tpu.memory_space<vmem>>, vector<4x12xf32>
    %cst_7 = arith.constant dense<0.000000e+00> : vector<4x128xf32>
    %15 = tpu.matmul %14, %11, %cst_7 {dimension_numbers = #tpu.dot_dimension_numbers<[1], [0], [0], [1], [0, 0, 1, 1], [], []>} : vector<4x12xf32>, vector<12x128xf32>, vector<4x128xf32> -> vector<4x128xf32>
    %16 = arith.addf %13, %15 : vector<4x128xf32>
    %cst_8 = arith.constant 0.000000e+00 : f32
    %17 = vector.broadcast %cst_8 : f32 to vector<4x128xf32>
    %18 = arith.maximumf %16, %17 : vector<4x128xf32>
    %c0_9 = arith.constant 0 : index
    %c0_10 = arith.constant 0 : index
    %19 = vector.load %arg5[%c0_9, %c0_10] : memref<4x1xf32, #tpu.memory_space<vmem>>, vector<4x1xf32>
    %20 = vector.broadcast %19 : vector<4x1xf32> to vector<4x128xf32>
    %21 = arith.mulf %20, %18 : vector<4x128xf32>
    %cst_11 = arith.constant dense<0.000000e+00> : vector<128xf32>
    %22 = vector.multi_reduction <add>, %21, %cst_11 [0] : vector<4x128xf32> to vector<128xf32>
    %23 = vector.shape_cast %22 : vector<128xf32> to vector<1x128xf32>
    %c0_12 = arith.constant 0 : index
    %c0_13 = arith.constant 0 : index
    %24 = vector.load %arg6[%c0_12, %c0_13] : memref<1x128xf32, #tpu.memory_space<vmem>>, vector<1x128xf32>
    tpu.vector_store %arg6[%c0_12, %c0_13], %23 {strides = array<i32>} : memref<1x128xf32, #tpu.memory_space<vmem>>, vector<1x128xf32>,
    return
  }
  func.func @transform_0(%arg0: i32) -> (i32, i32) {
    %c0_i32 = arith.constant 0 : i32
    %c0_i32_0 = arith.constant 0 : i32
    return %c0_i32, %arg0 : i32, i32
  }
  func.func @transform_1(%arg0: i32) -> (i32, i32) {
    %c0_i32 = arith.constant 0 : i32
    %c0_i32_0 = arith.constant 0 : i32
    return %c0_i32, %arg0 : i32, i32
  }
  func.func @transform_2(%arg0: i32) -> (i32, i32) {
    %c0_i32 = arith.constant 0 : i32
    %c0_i32_0 = arith.constant 0 : i32
    %c0_i32_1 = arith.constant 0 : i32
    return %c0_i32, %c0_i32_0 : i32, i32
  }
  func.func @transform_3(%arg0: i32) -> (i32, i32) {
    %c0_i32 = arith.constant 0 : i32
    %c0_i32_0 = arith.constant 0 : i32
    %c0_i32_1 = arith.constant 0 : i32
    return %c0_i32, %c0_i32_0 : i32, i32
  }
  func.func @transform_4(%arg0: i32) -> (i32, i32) {
    %c0_i32 = arith.constant 0 : i32
    %c0_i32_0 = arith.constant 0 : i32
    %c0_i32_1 = arith.constant 0 : i32
    return %c0_i32, %c0_i32_0 : i32, i32
  }
  func.func @transform_5(%arg0: i32) -> (i32, i32) {
    %c0_i32 = arith.constant 0 : i32
    %c0_i32_0 = arith.constant 0 : i32
    return %c0_i32, %arg0 : i32, i32
  }
}

</mosaic_0001>

<bundles_post_ra>
// kernel: ncf_cvib_forward.1
= control target key start
LH: loop header
LB: loop body
LE: loop exit
PB: predicated region body
PF: predicated region fallthrough
CT: control target
= control target key end

     0   :  { %v20_v0 = vlaneseq  ;;  %v270_v1 = vmov 0.0|0.0   ;;  %vm51_vm0 = vcmask 1043456   ;;  %vm271_vm1 = vmmov 0   ;;  %s325_s1 = inlined_call_operand.vmem [shape: s32[1,128], index: 1, kind: input, shape index: {}]   ;;  %s326_s0 = inlined_call_operand.vmem [shape: s32[1,128], index: 0, kind: input, shape index: {}]   ;;  %s327_s4 = inlined_call_operand.vmem [shape: f32[4,1], index: 4, kind: input, shape index: {}]   ;;  %s328_s3 = inlined_call_operand.vmem [shape: f32[4,12], index: 3, kind: input, shape index: {}]   ;;  %s329_s2 = inlined_call_operand.vmem [shape: f32[4,10], index: 2, kind: input, shape index: {}]   ;;  %s330_s5 = inlined_call_operand.vmem [shape: f32[1,128], index: 5, kind: output, shape index: {}]  }
   0x1   :  { %255 = vmatprep.subr.bf16.mxu1 %v270_v1  ;;  %259 = vmatprep.subr.bf16.mxu0 %v270_v1  ;;  %v226_v3 = vld [vmem:[%s325_s1] ss:$0 sm:$0xff]  ;;  %v272_v5 = vmov 0.0   ;;  %vm129_vm4 = vcmask 1041408   ;;  %v273_v8 = vmov 0   ;;  %v274_v11 = vmov 1.0  }
   0x2   :  { %v21_v2 = vshrl.u32 %v20_v0, 7  ;;  %v223_v4 = vld [vmem:[%s326_s0] ss:$0 sm:$0xff]  ;;  %245 = vmatprep.mubr.msk.f32.mxu1 %vm271_vm1, %v272_v5  ;;  %252 = vmatprep.mubr.msk.f32.mxu0 %vm271_vm1, %v272_v5  ;;  %vm47_vm9 = vcmask 97280   ;;  %vm125_vm10 = vcmask 80896  }
   0x3   :  { %v204_v6 = vld [vmem:[%s327_s4] sm:$0xf]  ;;  %269 = vset.pattern.permute.xlu0 %v273_v8 }
   0x4   :  { %v22_v7 = vadd.s32 8, %v21_v2  ;;  %vm39_vm2 = vcmp.eq.s32.totalorder %v21_v2, %v226_v3  ;;  %vm28_vm3 = vcmp.eq.s32.totalorder %v21_v2, %v223_v4  ;;  %207 = vperm.xlu0 %269, %v204_v6   ;;  %v46_v14 = vld [vmem:[%s328_s3] sm:$0xf] }
   0x5   :  { %vm257_vm6 = vmpackc.low %vm51_vm0, %vm39_vm2  ;;  %v45_v15 = vld [vmem:[%s329_s2] sm:$0xf] }
   0x6   :  { %vm40_vm5 = vcmp.eq.s32.totalorder %v22_v7, %v226_v3  ;;  %vm29_vm7 = vcmp.eq.s32.totalorder %v22_v7, %v223_v4  ;;  %vm261_vm8 = vmpackc.low %vm129_vm4, %vm28_vm3 }
   0x7   :  { %v228_v9 = vsel %vm40_vm5, 1.0, %v272_v5  ;;  %v225_v10 = vsel %vm29_vm7, 1.0, %v272_v5 }
   0x8   :  { %v256_v12 = vpack.c.bf16 %v228_v9, %v274_v11  ;;  %v260_v13 = vpack.c.bf16 %v225_v10, %v274_v11 }
   0xa   :  { %258 = vmatpush3.bf16.msk.msra.mxu1 %vm257_vm6, %v256_v12  ;;  %262 = vmatpush3.bf16.msk.msra.mxu0 %vm261_vm8, %v260_v13 }
   0xd   :  { %246 = vmatmul.mubr.msk.f32.vlgmr.msra.gmra.mrb[0].mxu1 %vm47_vm9, %v46_v14  ;;  %253 = vmatmul.mubr.msk.f32.vlgmr.msra.gmra.mrb[0].mxu0 %vm125_vm10, %v45_v15 }
  0x83   :  { %v208_v21 = vpop.permute.xlu0 %207 }
  0xe0   :  { %v121_v16 = vpop.f32.mrb[0].mxu1  ;;  %v199_v17 = vpop.f32.mrb[0].mxu0 }
  0xe1   :  { %v200_v18 = vadd.f32 %v199_v17, %v121_v16  ;;  %v247_v19 = vpop.f32.mrb[1].mxu1  ;;  %v254_v20 = vpop.f32.mrb[1].mxu0 }
  0xe3   :  { %v203_v22 = vmax.f32 %v200_v18, 0.0 }
  0xe5   :  { %v210_v23 = vmul.f32 %v208_v21, %v203_v22 }
  0xe7   :  { %v211_v24 = vsel %vm51_vm0, %v210_v23, 0.0 }
  0xe8   :  { %v212_v25 = vrot.slane %v211_v24, 4 }
  0xea   :  { %v213_v26 = vadd.f32 %v212_v25, %v211_v24 }
  0xec   :  { %v214_v27 = vrot.slane %v213_v26, 2 }
  0xee   :  { %v215_v28 = vadd.f32 %v214_v27, %v213_v26 }
  0xf0   :  { %v216_v29 = vrot.slane %v215_v28, 1 }
  0xf2   :  { %v217_v30 = vadd.f32 %v216_v29, %v215_v28 }
  0xf4   :  { %218 = vst [vmem:[%s330_s5] sm:$0x1] %v217_v30 }

</bundles_post_ra>
